<compile_context>
chip_gen: v5e
topology: v5e:2x2
jax: 0.10.0
libtpu: 0.0.40
codegen_flags: <defaults>
</compile_context>

<pallas_src>
import functools

import jax
import jax.numpy as jnp
from jax.experimental import pallas as pl
from jax.experimental.pallas import tpu as pltpu

P = 128          # padded layer width for hidden/action features (lane-dense, MXU native)
NEG = -1.0e30    # baked mask value for padded action columns


def _dqn_greedy_kernel(x_ref, w1_ref, b1_ref, w23_ref, act_ref):
    # x_ref:   (TB, S)   f32   raw states (no width-128 padding of the input)
    # w1_ref:  (S, P)    f32   layer-1 weights zero-padded to width P
    # b1_ref:  (1, P)    f32   layer-1 bias; column `hidden_dim` carries a constant 1.0
    # w23_ref: (2, P, P) f32   bias-augmented layer-2/3 blocks; layer-3 bias row holds
    #                          -1e30 in padded action columns (mask baked at pack time)
    # act_ref: (1, TB)   int32 lane-dense greedy actions
    x = x_ref[...]
    h1 = jnp.dot(x, w1_ref[...], preferred_element_type=jnp.float32) + b1_ref[...]
    h1 = jnp.maximum(h1, 0.0)                      # relu keeps the 1.0 bias carrier
    h2 = jnp.dot(h1, w23_ref[0], preferred_element_type=jnp.float32)
    h2 = jnp.maximum(h2, 0.0)
    q = jnp.dot(h2, w23_ref[1], preferred_element_type=jnp.float32)   # (TB, P)

    # Padded action columns already sit at -1e30 (baked into w23[1]), so no per-tile
    # mask is needed.  One tile-aligned transpose makes the reduction run along the
    # (cheap) sublane axis and the int32 store lane-dense.
    qt = q.T                                                          # (P, TB)
    row = jax.lax.broadcasted_iota(jnp.int32, qt.shape, 0)            # action index
    best = jnp.max(qt, axis=0, keepdims=True)                         # (1, TB)
    big = jnp.iinfo(jnp.int32).max
    act = jnp.min(jnp.where(qt == best, row, big), axis=0, keepdims=True)  # first max wins
    act_ref[...] = act


def pack_qnet_params(params, state_dim, hidden_dim, action_dim):
    """Pack (W1,b1,W2,b2,W3,b3) into lane-dense f32 buffers.

    Layer 1 stays a separate zero-padded (S,P) weight + (1,P) bias; the bias also
    emits a constant 1.0 in column `hidden_dim` (the bias carrier).  Layers 2 and 3
    are bias-augmented (P,P) blocks [[W,0],[b,e]] driven by that carrier.  The
    layer-3 bias row is -1e30 in padded action columns so the in-kernel argmax
    needs no mask.
    """
    assert state_dim <= P and hidden_dim + 1 <= P and action_dim <= P
    w1, b1, w2, b2, w3, b3 = params
    c = hidden_dim  # carrier column

    w1p = jnp.zeros((state_dim, P), jnp.float32).at[:, :hidden_dim].set(w1)
    b1p = jnp.zeros((1, P), jnp.float32)
    b1p = b1p.at[0, :hidden_dim].set(b1.reshape(-1)).at[0, c].set(1.0)

    w23 = jnp.zeros((2, P, P), jnp.float32)
    w23 = w23.at[0, :hidden_dim, :hidden_dim].set(w2)
    w23 = w23.at[0, c, :hidden_dim].set(b2.reshape(-1))
    w23 = w23.at[0, c, c].set(1.0)                      # re-emit carrier for layer 3
    w23 = w23.at[1, :hidden_dim, :action_dim].set(w3)
    w23 = w23.at[1, c, :action_dim].set(b3.reshape(-1))
    w23 = w23.at[1, c, action_dim:].set(NEG)            # bake padded-action mask
    return w1p, b1p, w23


def _tiles(batch):
    """(padded_batch, tile_rows): few large tiles, even count for v7x's 2 TCs."""
    if batch <= 128:
        return 128, 128                       # single grid step
    if batch <= 2048:
        bp = pl.cdiv(batch, 256) * 256        # even 2-tile split, tiles multiple of 128
        return bp, bp // 2
    bp = pl.cdiv(batch, 2048) * 2048          # cap tile rows so f32 intermediates stay small
    return bp, 1024


@jax.jit
def dqn_greedy_actions(x, w1p, b1p, w23):
    """Greedy DQN action selection: argmax_a Q_target(x[b])[a] per row. Returns (B,) int32."""
    B, S = x.shape
    bp, tb = _tiles(B)
    if bp != B:
        x = jnp.pad(x, ((0, bp - B), (0, 0)))  # pad rows compute garbage, sliced off below

    acts = pl.pallas_call(
        _dqn_greedy_kernel,
        out_shape=jax.ShapeDtypeStruct((1, bp), jnp.int32),   # lane-dense action row
        grid=(bp // tb,),
        in_specs=[
            pl.BlockSpec((tb, S), lambda i: (i, 0)),           # batch tile of raw states
            pl.BlockSpec((S, P), lambda i: (0, 0)),            # W1 (constant -> single DMA)
            pl.BlockSpec((1, P), lambda i: (0, 0)),            # b1 + carrier
            pl.BlockSpec((2, P, P), lambda i: (0, 0, 0)),      # packed layers 2/3
        ],
        out_specs=pl.BlockSpec((1, tb), lambda i: (0, i)),
        compiler_params=pltpu.CompilerParams(
            dimension_semantics=("parallel",),  # shard batch tiles across v7x's 2 TCs
        ),
    )(x, w1p, b1p, w23)
    return acts[0, :B]


def init_params(key, state_dim, hidden_dim, action_dim):
    """Deterministic synthetic target-network parameters, stored as (in, out)."""
    ks = jax.random.split(key, 6)
    s1 = 1.0 / jnp.sqrt(state_dim)
    s2 = 1.0 / jnp.sqrt(hidden_dim)
    w1 = jax.random.normal(ks[0], (state_dim, hidden_dim), jnp.float32) * s1
    b1 = jax.random.normal(ks[1], (1, hidden_dim), jnp.float32) * 0.01
    w2 = jax.random.normal(ks[2], (hidden_dim, hidden_dim), jnp.float32) * s2
    b2 = jax.random.normal(ks[3], (1, hidden_dim), jnp.float32) * 0.01
    w3 = jax.random.normal(ks[4], (hidden_dim, action_dim), jnp.float32) * s2
    b3 = jax.random.normal(ks[5], (1, action_dim), jnp.float32) * 0.01
    return (w1, b1, w2, b2, w3, b3)


if __name__ == "__main__":
    state_dim, hidden_dim, action_dim = 16, 32, 4
    batch = 256  # 2 row-tiles -> both v7x TensorCores busy; 1 sequential pass on v5e/v6e

    key = jax.random.PRNGKey(0)
    pkey, xkey = jax.random.split(key)
    params = init_params(pkey, state_dim, hidden_dim, action_dim)
    # Pack once, keep device-resident across calls (one ~200 KiB weight DMA per call).
    w1p, b1p, w23 = (jax.device_put(p) for p in
                     pack_qnet_params(params, state_dim, hidden_dim, action_dim))

    x = jax.random.normal(xkey, (batch, state_dim), jnp.float32)

    # TODO(synk): the eps-greedy branch (np.random.random() < eps -> random action) is
    # host-side RNG control flow outside the device compute path; only the greedy
    # target_model(x).argmax() path is implemented in the kernel.
    acts = dqn_greedy_actions(x, w1p, b1p, w23)
    acts = jax.block_until_ready(acts)

    # ---- reference check (plain JAX, f32) ----
    w1, b1, w2, b2, w3, b3 = params
    h1 = jnp.maximum(x @ w1 + b1, 0.0)
    h2 = jnp.maximum(h1 @ w2 + b2, 0.0)
    q_ref = h2 @ w3 + b3                       # (B, action_dim) f32
    ref_best = jnp.max(q_ref, axis=1)
    chosen_q = jnp.take_along_axis(q_ref, acts[:, None].astype(jnp.int32), axis=1)[:, 0]

    # MXU f32 accumulation may flip exactly-tied actions; require the chosen action's
    # f32 Q-value to be (numerically) the row maximum, and near-total exact agreement.
    assert bool(jnp.all(ref_best - chosen_q <= 5e-2 * (1.0 + jnp.abs(ref_best))))
    agree = float(jnp.mean((acts == jnp.argmax(q_ref, axis=1)).astype(jnp.float32)))
    assert agree >= 0.9

    action0 = int(acts[0])  # mirrors .argmax().item() for a single state
    print("KERNEL_OK")
</pallas_src>

<mosaic_0001>
module attributes {stable_mosaic.version = 11 : i64} {
  func.func @_dqn_greedy_kernel(%arg0: i32, %arg1: memref<128x16xf32, #tpu.memory_space<vmem>>, %arg2: memref<16x128xf32, #tpu.memory_space<vmem>>, %arg3: memref<1x128xf32, #tpu.memory_space<vmem>>, %arg4: memref<2x128x128xf32, #tpu.memory_space<vmem>>, %arg5: memref<1x128xi32, #tpu.memory_space<vmem>>) attributes {dimension_semantics = [#tpu.dimension_semantics<parallel>], iteration_bounds = array<i64: 2>, scalar_prefetch = 0 : i64, scratch_operands = 0 : i64, tpu.core_type = #tpu.core_type<tc>, window_params = [{transform_indices = @transform_0, window_bounds = array<i64: 128, 16>}, {pipeline_mode = #tpu.pipeline_mode<synchronous>, transform_indices = @transform_1, window_bounds = array<i64: 16, 128>}, {pipeline_mode = #tpu.pipeline_mode<synchronous>, transform_indices = @transform_2, window_bounds = array<i64: 1, 128>}, {pipeline_mode = #tpu.pipeline_mode<synchronous>, transform_indices = @transform_3, window_bounds = array<i64: 2, 128, 128>}, {transform_indices = @transform_4, window_bounds = array<i64: 1, 128>}]} {
    %c0 = arith.constant 0 : index
    %c0_0 = arith.constant 0 : index
    %0 = vector.load %arg1[%c0, %c0_0] : memref<128x16xf32, #tpu.memory_space<vmem>>, vector<128x16xf32>
    %c0_1 = arith.constant 0 : index
    %c0_2 = arith.constant 0 : index
    %1 = vector.load %arg2[%c0_1, %c0_2] : memref<16x128xf32, #tpu.memory_space<vmem>>, vector<16x128xf32>
    %cst = arith.constant dense<0.000000e+00> : vector<128x128xf32>
    %2 = tpu.matmul %0, %1, %cst {dimension_numbers = #tpu.dot_dimension_numbers<[1], [0], [0], [1], [0, 0, 1, 1], [], []>} : vector<128x16xf32>, vector<16x128xf32>, vector<128x128xf32> -> vector<128x128xf32>
    %c0_3 = arith.constant 0 : index
    %c0_4 = arith.constant 0 : index
    %3 = vector.load %arg3[%c0_3, %c0_4] : memref<1x128xf32, #tpu.memory_space<vmem>>, vector<1x128xf32>
    %4 = vector.broadcast %3 : vector<1x128xf32> to vector<128x128xf32>
    %5 = arith.addf %2, %4 : vector<128x128xf32>
    %cst_5 = arith.constant 0.000000e+00 : f32
    %6 = vector.broadcast %cst_5 : f32 to vector<128x128xf32>
    %7 = arith.maximumf %5, %6 : vector<128x128xf32>
    %c0_6 = arith.constant 0 : index
    %c0_7 = arith.constant 0 : index
    %c0_8 = arith.constant 0 : index
    %8 = vector.load %arg4[%c0_6, %c0_7, %c0_8] : memref<2x128x128xf32, #tpu.memory_space<vmem>>, vector<1x128x128xf32>
    %9 = vector.shape_cast %8 : vector<1x128x128xf32> to vector<128x128xf32>
    %cst_9 = arith.constant dense<0.000000e+00> : vector<128x128xf32>
    %10 = tpu.matmul %7, %9, %cst_9 {dimension_numbers = #tpu.dot_dimension_numbers<[1], [0], [0], [1], [0, 0, 1, 1], [], []>} : vector<128x128xf32>, vector<128x128xf32>, vector<128x128xf32> -> vector<128x128xf32>
    %cst_10 = arith.constant 0.000000e+00 : f32
    %11 = vector.broadcast %cst_10 : f32 to vector<128x128xf32>
    %12 = arith.maximumf %10, %11 : vector<128x128xf32>
    %c1 = arith.constant 1 : index
    %c0_11 = arith.constant 0 : index
    %c0_12 = arith.constant 0 : index
    %13 = vector.load %arg4[%c1, %c0_11, %c0_12] : memref<2x128x128xf32, #tpu.memory_space<vmem>>, vector<1x128x128xf32>
    %14 = vector.shape_cast %13 : vector<1x128x128xf32> to vector<128x128xf32>
    %cst_13 = arith.constant dense<0.000000e+00> : vector<128x128xf32>
    %15 = tpu.matmul %12, %14, %cst_13 {dimension_numbers = #tpu.dot_dimension_numbers<[1], [0], [0], [1], [0, 0, 1, 1], [], []>} : vector<128x128xf32>, vector<128x128xf32>, vector<128x128xf32> -> vector<128x128xf32>
    %16 = tpu.transpose %15, [1, 0] : vector<128x128xf32> -> vector<128x128xf32>
    %17 = tpu.iota {dimensions = array<i32: 0>} : vector<128x128xi32>
    %cst_14 = arith.constant dense<0xFF800000> : vector<128xf32>
    %18 = vector.multi_reduction <maximumf>, %16, %cst_14 [0] : vector<128x128xf32> to vector<128xf32>
    %19 = vector.shape_cast %18 : vector<128xf32> to vector<1x128xf32>
    %20 = vector.broadcast %19 : vector<1x128xf32> to vector<128x128xf32>
    %21 = arith.cmpf oeq, %16, %20 : vector<128x128xf32>
    %c2147483647_i32 = arith.constant 2147483647 : i32
    %22 = vector.broadcast %c2147483647_i32 : i32 to vector<128x128xi32>
    %23 = arith.select %21, %17, %22 : vector<128x128xi1>, vector<128x128xi32>
    %cst_15 = arith.constant dense<2147483647> : vector<128xi32>
    %24 = vector.multi_reduction <minsi>, %23, %cst_15 [0] : vector<128x128xi32> to vector<128xi32>
    %25 = vector.shape_cast %24 : vector<128xi32> to vector<1x128xi32>
    %c0_16 = arith.constant 0 : index
    %c0_17 = arith.constant 0 : index
    %26 = vector.load %arg5[%c0_16, %c0_17] : memref<1x128xi32, #tpu.memory_space<vmem>>, vector<1x128xi32>
    tpu.vector_store %arg5[%c0_16, %c0_17], %25 {strides = array<i32>} : memref<1x128xi32, #tpu.memory_space<vmem>>, vector<1x128xi32>,
    return
  }
  func.func @transform_0(%arg0: i32) -> (i32, i32) {
    %c0_i32 = arith.constant 0 : i32
    %c0_i32_0 = arith.constant 0 : i32
    return %arg0, %c0_i32 : i32, i32
  }
  func.func @transform_1(%arg0: i32) -> (i32, i32) {
    %c0_i32 = arith.constant 0 : i32
    %c0_i32_0 = arith.constant 0 : i32
    %c0_i32_1 = arith.constant 0 : i32
    return %c0_i32, %c0_i32_0 : i32, i32
  }
  func.func @transform_2(%arg0: i32) -> (i32, i32) {
    %c0_i32 = arith.constant 0 : i32
    %c0_i32_0 = arith.constant 0 : i32
    %c0_i32_1 = arith.constant 0 : i32
    return %c0_i32, %c0_i32_0 : i32, i32
  }
  func.func @transform_3(%arg0: i32) -> (i32, i32, i32) {
    %c0_i32 = arith.constant 0 : i32
    %c0_i32_0 = arith.constant 0 : i32
    %c0_i32_1 = arith.constant 0 : i32
    %c0_i32_2 = arith.constant 0 : i32
    return %c0_i32, %c0_i32_0, %c0_i32_1 : i32, i32, i32
  }
  func.func @transform_4(%arg0: i32) -> (i32, i32) {
    %c0_i32 = arith.constant 0 : i32
    %c0_i32_0 = arith.constant 0 : i32
    return %c0_i32, %arg0 : i32, i32
  }
}

</mosaic_0001>

<bundles_post_ra>
// kernel: dqn_greedy_actions.1
= control target key start
LH: loop header
LB: loop body
LE: loop exit
PB: predicated region body
PF: predicated region fallthrough
CT: control target
= control target key end

     0   :  { %9 = vsyncpa [#allocation3], 0  ;;  %s1270_s0 = inlined_call_operand.vmem [shape: f32[256,16], index: 0, kind: input, shape index: {}]   ;;  %s1271_s1 = inlined_call_operand.vmem [shape: f32[16,128], index: 1, kind: input, shape index: {}]   ;;  %s1272_s2 = inlined_call_operand.vmem [shape: f32[1,128], index: 2, kind: input, shape index: {}]   ;;  %s1273_s3 = inlined_call_operand.vmem [shape: f32[2,128,128], index: 3, kind: input, shape index: {}]   ;;  %s1274_s4 = inlined_call_operand.hbm [shape: s32[1,256], index: 4, kind: output, shape index: {}]  }
   0x1   :  { %11 = vsyncpa [#allocation3 + $0x1], 0  ;;  %s939_s15 = smov 0   ;;  %s941_s16 = smov 0  }
   0x2   :  { %s943_s17 = smov 0   ;;  %s945_s18 = smov 0  }
   0x3 LB: > { %s960_s19 = sadd.s32 4294967295, %s912_s18   ;;  %s738_s20 = sadd.s32 4294967294, %s912_s18   ;;  %s912_s18 = sphi %s945_s18, %s1280_s18   ;;  %s908_s17 = sphi %s943_s17, %s1279_s17   ;;  %s904_s16 = sphi %s941_s16, %s1278_s16   ;;  %s900_s15 = sphi %s939_s15, %s1277_s15  }
   0x4   : > { %s964_s21 = sadd.s32 1, %s912_s18   ;;  %s113_s22 = sadd.s32 1, %s908_s17 }
   0x5   : > { %s110_s23 = ssub.s32 %s912_s18, %s964_s21  ;;  %p123_p0 = scmp.ne.s32.totalorder %s908_s17, %s904_s16 }
   0x6   : > { %p111_p1 = scmp.eq.s32.totalorder %s110_s23, 0  ;;  %p124_p2 = scmp.eq.s32.totalorder %s960_s19, 1 }
   0x7   : > { %p129_p3 = scmp.ne.s32.totalorder %s904_s16, %s900_s15  ;;  %p130_p4 = scmp.eq.s32.totalorder %s738_s20, 1 }
   0x8   : > { %s975_s24 = scalar_select %p111_p1, %s908_s17, %s113_s22  }
   0x9   : > { %p977_p5 = por %p124_p2, %p123_p0  ;;  %p981_p6 = por %p130_p4, %p129_p3 }
   0xa   : > { %p741_p7 = scmp.ge.s32.totalorder %s912_s18, 1  ;;  %p166_p8 = scmp.lt.s32.totalorder %s912_s18, 3 }
   0xc   : > { %p167_p9 = pnand %p741_p7, %p166_p8 }
   0xd   : > { %s742_s5 = sshll.u32 (!%p167_p9), %s960_s19, 4  ;;  %s189_s10 = sand.u32 (!%p167_p9), 1, %s904_s16  }
   0xe   : > { %170 = sbr.rel (%p167_p9) target bundleno = 756 (0x2f4), region = 36  ;;  %p192_p10 = scmp.lt.s32.totalorder (!%p167_p9), %s742_s5, 31 }
   0xf   : > { %s679_s12 = scalar_lea.hbm (!%p167_p9), %s1274_s4, %s960_s19  ;;  %s190_s13 = scalar_lea.vmem (!%p167_p9), [#allocation2], %s189_s10 }
  0x10   : > { %s681_s14 = sshll.u32 (!%p167_p9), %s190_s13, 4  ;;  %s683_s20 = sshll.u32 (!%p167_p9), %s679_s12, 4  ;;  %s682_s14 = int_to_ptr.vmem [resolvable:$true] %s681_s14  ;;  %s684_s20 = int_to_ptr.hbm [resolvable:$true] %s683_s20 }
  0x11   : > { %s671_s22 = scalar_lea.sflag (!%p167_p9), [#allocation3], %s189_s10  ;;  %s864_s23 = sshra.s32 (!%p167_p9), %s684_s20, 4  ;;  %s865_s23 = int_to_ptr.hbm [resolvable:$true] %s864_s23 }
  0x12   : > { %s866_s27 = scalar_lea.hbm (!%p167_p9), %s865_s23, 1  ;;  %s870_s29 = scalar_lea.hbm (!%p167_p9), %s1274_s4, 2 }
  0x13   : > { %v214_v0 = vld [vmem:[%s1271_s1 + $0x8] sm:$0xff]  ;;  %v213_v1 = vld [vmem:[%s1271_s1] sm:$0xff]  ;;  %s1282_s5 = smov (!%p192_p10, %s742_s5), 31  ;;  %vm219_vm0 = vcmask 130048   ;;  %v364_v11 = vld [vmem:[%s1273_s3 + $0x78] sm:$0xff]  ;;  %p867_p11 = scmp.ne.s32.totalorder %s865_s23, %s866_s27 }
  0x14   : > { %282 = vmatpush.msra.mxu0 %v214_v0  ;;  %s743_s6 = sshll.u32 %s1282_s5, 3  ;;  %v363_v12 = vld [vmem:[%s1273_s3 + $0x70] sm:$0xff]  ;;  %365 = vmatpush.msra.mxu1 %v364_v11  ;;  %v362_v13 = vld [vmem:[%s1273_s3 + $0x68] sm:$0xff]  ;;  %v361_v15 = vld [vmem:[%s1273_s3 + $0x60] sm:$0xff]  ;;  %p871_p0 = scmp.lt.s32.totalorder %s865_s23, %s1274_s4 }
  0x15   : > { %s997_s9 = scalar_lea.vmem %s1270_s0, %s743_s6  ;;  %778 = vmatpush.msra.mxu3 %v364_v11  ;;  %v360_v16 = vld [vmem:[%s1273_s3 + $0x58] sm:$0xff]  ;;  %v359_v17 = vld [vmem:[%s1273_s3 + $0x50] sm:$0xff]  ;;  %v358_v18 = vld [vmem:[%s1273_s3 + $0x48] sm:$0xff]  ;;  %p868_p12 = pnand %p867_p11, %p977_p5 }
  0x16   : > { %283 = vmatpush.msra.mxu0 %v213_v1  ;;  %v197_v2 = vld [vmem:[%s997_s9] sm:$0xff]  ;;  %v198_v3 = vld [vmem:[%s997_s9 + $0x8] sm:$0xff]  ;;  %v199_v4 = vld [vmem:[%s997_s9 + $0x10] sm:$0xff]  ;;  %366 = vmatpush.msra.mxu1 %v363_v12  ;;  %p872_p1 = scmp.lt.s32.totalorder %s870_s29, %s866_s27 }
  0x17   : > { %744 = vmatmul.msk.f32.vlgmr.msra.gmra.mxu0 %vm219_vm0, %v197_v2  ;;  %v200_v5 = vld [vmem:[%s997_s9 + $0x18] sm:$0xff]  ;;  %v201_v6 = vld [vmem:[%s997_s9 + $0x20] sm:$0xff]  ;;  %v202_v7 = vld [vmem:[%s997_s9 + $0x28] sm:$0xff]  ;;  %779 = vmatpush.msra.mxu3 %v363_v12  ;;  %p869_p13 = pneg %p868_p12 }
  0x18   : > { %v203_v8 = vld [vmem:[%s997_s9 + $0x30] sm:$0xff]  ;;  %v204_v9 = vld [vmem:[%s997_s9 + $0x38] sm:$0xff]  ;;  %v205_v10 = vld [vmem:[%s997_s9 + $0x40] sm:$0xff]  ;;  %367 = vmatpush.msra.mxu1 %v362_v13  ;;  %p873_p2 = por %p872_p1, %p871_p0 }
  0x19   : > { %v206_v14 = vld [vmem:[%s997_s9 + $0x48] sm:$0xff]  ;;  %780 = vmatpush.msra.mxu3 %v362_v13  ;;  %v207_v19 = vld [vmem:[%s997_s9 + $0x50] sm:$0xff]  ;;  %v357_v20 = vld [vmem:[%s1273_s3 + $0x40] sm:$0xff] }
  0x1a   : > { %368 = vmatpush.msra.mxu1 %v361_v15  ;;  %v356_v21 = vld [vmem:[%s1273_s3 + $0x38] sm:$0xff]  ;;  %v355_v22 = vld [vmem:[%s1273_s3 + $0x30] sm:$0xff]  ;;  %v354_v23 = vld [vmem:[%s1273_s3 + $0x28] sm:$0xff]  ;;  %p874_p3 = pnand %p873_p2, %p869_p13 }
  0x1b   : > { %781 = vmatpush.msra.mxu3 %v361_v15  ;;  %v208_v24 = vld [vmem:[%s997_s9 + $0x58] sm:$0xff]  ;;  %v353_v25 = vld [vmem:[%s1273_s3 + $0x20] sm:$0xff]  ;;  %v351_v27 = vld [vmem:[%s1273_s3 + $0x10] sm:$0xff] }
  0x1c   : > { %369 = vmatpush.msra.mxu1 %v360_v16  ;;  %v352_v26 = vld [vmem:[%s1273_s3 + $0x18] sm:$0xff]  ;;  %v209_v28 = vld [vmem:[%s997_s9 + $0x60] sm:$0xff]  ;;  %v350_v29 = vld [vmem:[%s1273_s3 + $0x8] sm:$0xff] }
  0x1d   : > { %782 = vmatpush.msra.mxu3 %v360_v16  ;;  %v349_v30 = vld [vmem:[%s1273_s3] sm:$0xff]  ;;  %v210_v31 = vld [vmem:[%s997_s9 + $0x68] sm:$0xff]  ;;  %v211_v32 = vld [vmem:[%s997_s9 + $0x70] sm:$0xff] }
  0x1e   : > { %370 = vmatpush.msra.mxu1 %v359_v17  ;;  %v212_v33 = vld [vmem:[%s997_s9 + $0x78] sm:$0xff]  ;;  %v1082_v34 = vld [vmem:[%s1272_s2] ss:$0 sm:$0xff]  ;;  %v774_v63 = vld [vmem:[%s1273_s3 + $0xf0] sm:$0xff] }
  0x1f   : > { %745 = vmatmul.msk.f32.gmra.mxu0 %vm219_vm0, %v198_v3  ;;  %783 = vmatpush.msra.mxu3 %v359_v17  ;;  %v775_v62 = vld [vmem:[%s1273_s3 + $0xf8] sm:$0xff]  ;;  %v773_v2 = vld [vmem:[%s1273_s3 + $0xe8] sm:$0xff]  ;;  %v768_v11 = vld [vmem:[%s1273_s3 + $0xc0] sm:$0xff] }
  0x20   : > { %371 = vmatpush.msra.mxu1 %v358_v18  ;;  %463 = vmatpush.msra.mxu2 %v775_v62  ;;  %v767_v12 = vld [vmem:[%s1273_s3 + $0xb8] sm:$0xff]  ;;  %v766_v13 = vld [vmem:[%s1273_s3 + $0xb0] sm:$0xff]  ;;  %v765_v16 = vld [vmem:[%s1273_s3 + $0xa8] sm:$0xff] }
  0x21   : > { %784 = vmatpush.msra.mxu3 %v358_v18  ;;  %v764_v18 = vld [vmem:[%s1273_s3 + $0xa0] sm:$0xff] }
  0x22   : > { %372 = vmatpush.msra.mxu1 %v357_v20  ;;  %464 = vmatpush.msra.mxu2 %v774_v63 }
  0x23   : > { %785 = vmatpush.msra.mxu3 %v357_v20  ;;  %v762_v20 = vld [vmem:[%s1273_s3 + $0x90] sm:$0xff] }
  0x24   : > { %373 = vmatpush.msra.mxu1 %v356_v21  ;;  %465 = vmatpush.msra.mxu2 %v773_v2 }
  0x25   : > { %786 = vmatpush.msra.mxu3 %v356_v21 }
  0x26   : > { %374 = vmatpush.msra.mxu1 %v355_v22 }
  0x27   : > { %746 = vmatmul.msk.f32.gmra.mxu0 %vm219_vm0, %v199_v4  ;;  %787 = vmatpush.msra.mxu3 %v355_v22  ;;  %v772_v4 = vld [vmem:[%s1273_s3 + $0xe0] sm:$0xff] }
  0x28   : > { %375 = vmatpush.msra.mxu1 %v354_v23  ;;  %466 = vmatpush.msra.mxu2 %v772_v4 }
  0x29   : > { %788 = vmatpush.msra.mxu3 %v354_v23  ;;  %v761_v23 = vld [vmem:[%s1273_s3 + $0x88] sm:$0xff] }
  0x2a   : > { %376 = vmatpush.msra.mxu1 %v353_v25 }
  0x2b   : > { %789 = vmatpush.msra.mxu3 %v353_v25  ;;  %v760_v25 = vld [vmem:[%s1273_s3 + $0x80] sm:$0xff] }
  0x2c   : > { %377 = vmatpush.msra.mxu1 %v352_v26 }
  0x2d   : > { %790 = vmatpush.msra.mxu3 %v352_v26 }
  0x2e   : > { %378 = vmatpush.msra.mxu1 %v351_v27 }
  0x2f   : > { %747 = vmatmul.msk.f32.gmra.mxu0 %vm219_vm0, %v200_v5  ;;  %791 = vmatpush.msra.mxu3 %v351_v27  ;;  %v771_v5 = vld [vmem:[%s1273_s3 + $0xd8] sm:$0xff] }
  0x30   : > { %379 = vmatpush.msra.mxu1 %v350_v29  ;;  %467 = vmatpush.msra.mxu2 %v771_v5 }
  0x31   : > { %792 = vmatpush.msra.mxu3 %v350_v29 }
  0x32   : > { %380 = vmatpush.msra.mxu1 %v349_v30 }
  0x33   : > { %793 = vmatpush.msra.mxu3 %v349_v30 }
  0x35   : > { %794 = vmatpush.msrb.mxu3 %v775_v62 }
  0x37   : > { %748 = vmatmul.msk.f32.gmra.mxu0 %vm219_vm0, %v201_v6  ;;  %795 = vmatpush.msrb.mxu3 %v774_v63  ;;  %v770_v6 = vld [vmem:[%s1273_s3 + $0xd0] sm:$0xff] }
  0x38   : > { %468 = vmatpush.msra.mxu2 %v770_v6 }
  0x39   : > { %796 = vmatpush.msrb.mxu3 %v773_v2 }
  0x3b   : > { %797 = vmatpush.msrb.mxu3 %v772_v4 }
  0x3d   : > { %798 = vmatpush.msrb.mxu3 %v771_v5 }
  0x3f   : > { %749 = vmatmul.msk.f32.gmra.mxu0 %vm219_vm0, %v202_v7  ;;  %799 = vmatpush.msrb.mxu3 %v770_v6 }
  0x47   : > { %750 = vmatmul.msk.f32.gmra.mxu0 %vm219_vm0, %v203_v8 }
  0x4f   : > { %751 = vmatmul.msk.f32.gmra.mxu0 %vm219_vm0, %v204_v9  ;;  %v769_v9 = vld [vmem:[%s1273_s3 + $0xc8] sm:$0xff] }
  0x50   : > { %469 = vmatpush.msra.mxu2 %v769_v9  ;;  %800 = vmatpush.msrb.mxu3 %v769_v9 }
  0x52   : > { %470 = vmatpush.msra.mxu2 %v768_v11  ;;  %801 = vmatpush.msrb.mxu3 %v768_v11 }
  0x54   : > { %471 = vmatpush.msra.mxu2 %v767_v12  ;;  %802 = vmatpush.msrb.mxu3 %v767_v12 }
  0x56   : > { %472 = vmatpush.msra.mxu2 %v766_v13  ;;  %803 = vmatpush.msrb.mxu3 %v766_v13 }
  0x57   : > { %752 = vmatmul.msk.f32.gmra.mxu0 %vm219_vm0, %v205_v10 }
  0x58   : > { %473 = vmatpush.msra.mxu2 %v765_v16  ;;  %804 = vmatpush.msrb.mxu3 %v765_v16 }
  0x5a   : > { %474 = vmatpush.msra.mxu2 %v764_v18  ;;  %805 = vmatpush.msrb.mxu3 %v764_v18 }
  0x5f   : > { %753 = vmatmul.msk.f32.gmra.mxu0 %vm219_vm0, %v206_v14 }
  0x67   : > { %754 = vmatmul.msk.f32.gmra.mxu0 %vm219_vm0, %v207_v19  ;;  %v763_v19 = vld [vmem:[%s1273_s3 + $0x98] sm:$0xff] }
  0x68   : > { %475 = vmatpush.msra.mxu2 %v763_v19  ;;  %806 = vmatpush.msrb.mxu3 %v763_v19 }
  0x6a   : > { %476 = vmatpush.msra.mxu2 %v762_v20  ;;  %807 = vmatpush.msrb.mxu3 %v762_v20 }
  0x6c   : > { %477 = vmatpush.msra.mxu2 %v761_v23  ;;  %808 = vmatpush.msrb.mxu3 %v761_v23 }
  0x6e   : > { %478 = vmatpush.msra.mxu2 %v760_v25  ;;  %809 = vmatpush.msrb.mxu3 %v760_v25 }
  0x6f   : > { %755 = vmatmul.msk.f32.gmra.mxu0 %vm219_vm0, %v208_v24 }
  0x77   : > { %756 = vmatmul.msk.f32.gmra.mxu0 %vm219_vm0, %v209_v28 }
  0x7f   : > { %757 = vmatmul.msk.f32.gmra.mxu0 %vm219_vm0, %v210_v31 }
  0x87   : > { %758 = vmatmul.msk.f32.gmra.mxu0 %vm219_vm0, %v211_v32 }
  0x8f   : > { %759 = vmatmul.msk.f32.gmra.mxu0 %vm219_vm0, %v212_v33 }
  0x94   : > { %v285_v35 = vpop.f32.mrf.mxu0 }
  0x95   : > { %v286_v36 = vadd.f32 %v1082_v34, %v285_v35 }
  0x97   : > { %v333_v37 = vmax.f32 %v286_v36, 0.0 }
  0x99   : > { %381 = vmatmul.f32.vlgmr.msra.gmra.mxu1 %v333_v37 }
  0x9c   : > { %v288_v38 = vpop.f32.mrf.mxu0 }
  0x9d   : > { %v289_v39 = vadd.f32 %v1082_v34, %v288_v38 }
  0x9f   : > { %v334_v40 = vmax.f32 %v289_v39, 0.0 }
  0xa1   : > { %384 = vmatmul.f32.gmra.mxu1 %v334_v40 }
  0xa4   : > { %v291_v41 = vpop.f32.mrf.mxu0 }
  0xa5   : > { %v292_v42 = vadd.f32 %v1082_v34, %v291_v41 }
  0xa7   : > { %v335_v43 = vmax.f32 %v292_v42, 0.0 }
  0xa9   : > { %387 = vmatmul.f32.gmra.mxu1 %v335_v43 }
  0xac   : > { %v294_v44 = vpop.f32.mrf.mxu0 }
  0xad   : > { %v295_v45 = vadd.f32 %v1082_v34, %v294_v44 }
  0xaf   : > { %v336_v46 = vmax.f32 %v295_v45, 0.0 }
  0xb1   : > { %390 = vmatmul.f32.gmra.mxu1 %v336_v46 }
  0xb4   : > { %v297_v47 = vpop.f32.mrf.mxu0 }
  0xb5   : > { %v298_v48 = vadd.f32 %v1082_v34, %v297_v47 }
  0xb7   : > { %v337_v49 = vmax.f32 %v298_v48, 0.0 }
  0xb9   : > { %393 = vmatmul.f32.gmra.mxu1 %v337_v49 }
  0xbc   : > { %v300_v50 = vpop.f32.mrf.mxu0 }
  0xbd   : > { %v301_v51 = vadd.f32 %v1082_v34, %v300_v50 }
  0xbf   : > { %v338_v52 = vmax.f32 %v301_v51, 0.0 }
  0xc1   : > { %396 = vmatmul.f32.gmra.mxu1 %v338_v52 }
  0xc4   : > { %v303_v53 = vpop.f32.mrf.mxu0 }
  0xc5   : > { %v304_v54 = vadd.f32 %v1082_v34, %v303_v53 }
  0xc7   : > { %v339_v55 = vmax.f32 %v304_v54, 0.0 }
  0xc9   : > { %399 = vmatmul.f32.gmra.mxu1 %v339_v55 }
  0xcc   : > { %v306_v56 = vpop.f32.mrf.mxu0 }
  0xcd   : > { %v307_v57 = vadd.f32 %v1082_v34, %v306_v56 }
  0xcf   : > { %v340_v58 = vmax.f32 %v307_v57, 0.0 }
  0xd1   : > { %402 = vmatmul.f32.gmra.mxu1 %v340_v58 }
  0xd4   : > { %v309_v59 = vpop.f32.mrf.mxu0 }
  0xd5   : > { %v310_v60 = vadd.f32 %v1082_v34, %v309_v59 }
  0xd7   : > { %v341_v61 = vmax.f32 %v310_v60, 0.0 }
  0xd9   : > { %405 = vmatmul.f32.gmra.mxu1 %v341_v61 }
  0xdc   : > { %v312_v0 = vpop.f32.mrf.mxu0 }
  0xdd   : > { %v313_v1 = vadd.f32 %v1082_v34, %v312_v0 }
  0xdf   : > { %v342_v3 = vmax.f32 %v313_v1, 0.0 }
  0xe1   : > { %408 = vmatmul.f32.gmra.mxu1 %v342_v3 }
  0xe4   : > { %v315_v7 = vpop.f32.mrf.mxu0 }
  0xe5   : > { %v316_v8 = vadd.f32 %v1082_v34, %v315_v7 }
  0xe7   : > { %v343_v10 = vmax.f32 %v316_v8, 0.0 }
  0xe9   : > { %411 = vmatmul.f32.gmra.mxu1 %v343_v10 }
  0xec   : > { %v318_v14 = vpop.f32.mrf.mxu0 }
  0xed   : > { %v319_v15 = vadd.f32 %v1082_v34, %v318_v14 }
  0xef   : > { %v344_v17 = vmax.f32 %v319_v15, 0.0 }
  0xf1   : > { %414 = vmatmul.f32.gmra.mxu1 %v344_v17 }
  0xf4   : > { %v321_v21 = vpop.f32.mrf.mxu0 }
  0xf5   : > { %v322_v22 = vadd.f32 %v1082_v34, %v321_v21 }
  0xf7   : > { %v345_v24 = vmax.f32 %v322_v22, 0.0 }
  0xf9   : > { %417 = vmatmul.f32.vlgmr.msra.gmra.mxu3 %v345_v24 }
  0xfc   : > { %v324_v26 = vpop.f32.mrf.mxu0 }
  0xfd   : > { %v325_v27 = vadd.f32 %v1082_v34, %v324_v26 }
  0xff   : > { %v346_v28 = vmax.f32 %v325_v27, 0.0 }
 0x101   : > { %420 = vmatmul.f32.gmra.mxu3 %v346_v28 }
 0x104   : > { %v327_v29 = vpop.f32.mrf.mxu0 }
 0x105   : > { %v328_v30 = vadd.f32 %v1082_v34, %v327_v29 }
 0x107   : > { %v347_v31 = vmax.f32 %v328_v30, 0.0 }
 0x109   : > { %423 = vmatmul.f32.gmra.mxu3 %v347_v31 }
 0x10c   : > { %v330_v32 = vpop.f32.mrf.mxu0 }
 0x10d   : > { %v331_v33 = vadd.f32 %v1082_v34, %v330_v32 }
 0x10f   : > { %v348_v35 = vmax.f32 %v331_v33, 0.0 }
 0x111   : > { %426 = vmatmul.f32.gmra.mxu3 %v348_v35 }
 0x116   : > { %v382_v36 = vpop.f32.mrf.mxu1 }
 0x117   : > { %v430_v37 = vmax.f32 %v382_v36, 0.0 }
 0x119   : > { %479 = vmatmul.f32.vlgmr.msra.gmra.mxu2 %v430_v37 }
 0x11e   : > { %v385_v38 = vpop.f32.mrf.mxu1 }
 0x11f   : > { %v431_v39 = vmax.f32 %v385_v38, 0.0 }
 0x121   : > { %482 = vmatmul.f32.gmra.mxu2 %v431_v39 }
 0x126   : > { %v388_v40 = vpop.f32.mrf.mxu1 }
 0x127   : > { %v432_v41 = vmax.f32 %v388_v40, 0.0 }
 0x129   : > { %485 = vmatmul.f32.gmra.mxu2 %v432_v41 }
 0x12e   : > { %v391_v42 = vpop.f32.mrf.mxu1 }
 0x12f   : > { %v433_v43 = vmax.f32 %v391_v42, 0.0 }
 0x131   : > { %488 = vmatmul.f32.gmra.mxu2 %v433_v43 }
 0x136   : > { %v394_v44 = vpop.f32.mrf.mxu1 }
 0x137   : > { %v434_v45 = vmax.f32 %v394_v44, 0.0 }
 0x139   : > { %491 = vmatmul.f32.gmra.mxu2 %v434_v45 }
 0x13e   : > { %v397_v46 = vpop.f32.mrf.mxu1 }
 0x13f   : > { %v435_v47 = vmax.f32 %v397_v46, 0.0 }
 0x141   : > { %494 = vmatmul.f32.gmra.mxu2 %v435_v47 }
 0x146   : > { %v400_v34 = vpop.f32.mrf.mxu1 }
 0x147   : > { %v436_v48 = vmax.f32 %v400_v34, 0.0 }
 0x149   : > { %497 = vmatmul.f32.gmra.mxu2 %v436_v48 }
 0x14e   : > { %v403_v49 = vpop.f32.mrf.mxu1 }
 0x14f   : > { %v437_v50 = vmax.f32 %v403_v49, 0.0 }
 0x151   : > { %500 = vmatmul.f32.gmra.mxu2 %v437_v50  ;;  %v560_v50 = vlaneseq }
 0x156   : > { %v406_v51 = vpop.f32.mrf.mxu1 }
 0x157   : > { %v438_v52 = vmax.f32 %v406_v51, 0.0 }
 0x159   : > { %503 = vmatmul.f32.gmra.mxu2 %v438_v52 }
 0x15e   : > { %v409_v53 = vpop.f32.mrf.mxu1 }
 0x15f   : > { %v439_v54 = vmax.f32 %v409_v53, 0.0  ;;  %v561_v53 = vshrl.u32 %v560_v50, 7 }
 0x161   : > { %506 = vmatmul.f32.gmra.mxu2 %v439_v54 }
 0x166   : > { %v412_v55 = vpop.f32.mrf.mxu1 }
 0x167   : > { %v440_v56 = vmax.f32 %v412_v55, 0.0 }
 0x169   : > { %509 = vmatmul.f32.gmra.mxu2 %v440_v56  ;;  %v562_v56 = vadd.s32 8, %v561_v53 }
 0x16e   : > { %v415_v57 = vpop.f32.mrf.mxu1 }
 0x16f   : > { %v441_v58 = vmax.f32 %v415_v57, 0.0  ;;  %v563_v57 = vadd.s32 16, %v561_v53 }
 0x171   : > { %512 = vmatmul.f32.gmra.mxu2 %v441_v58 }
 0x17c   : > { %v418_v59 = vpop.f32.mrf.mxu3 }
 0x17d   : > { %v442_v60 = vmax.f32 %v418_v59, 0.0  ;;  %v564_v59 = vadd.s32 24, %v561_v53 }
 0x17f   : > { %515 = vmatmul.f32.vlgmr.msrb.gmra.mxu3 %v442_v60  ;;  %v565_v60 = vadd.s32 32, %v561_v53 }
 0x184   : > { %v421_v61 = vpop.f32.mrf.mxu3 }
 0x185   : > { %v443_v62 = vmax.f32 %v421_v61, 0.0  ;;  %v566_v61 = vadd.s32 40, %v561_v53 }
 0x187   : > { %518 = vmatmul.f32.gmra.mxu3 %v443_v62  ;;  %v567_v62 = vadd.s32 48, %v561_v53 }
 0x18c   : > { %v424_v63 = vpop.f32.mrf.mxu3 }
 0x18d   : > { %v444_v0 = vmax.f32 %v424_v63, 0.0  ;;  %v568_v63 = vadd.s32 56, %v561_v53 }
 0x18f   : > { %521 = vmatmul.f32.gmra.mxu3 %v444_v0  ;;  %v569_v0 = vadd.s32 64, %v561_v53 }
 0x194   : > { %v427_v1 = vpop.f32.mrf.mxu3 }
 0x195   : > { %v445_v2 = vmax.f32 %v427_v1, 0.0  ;;  %v570_v1 = vadd.s32 72, %v561_v53 }
 0x197   : > { %524 = vmatmul.f32.gmra.mxu3 %v445_v2 }
 0x19c   : > { %v480_v3 = vpop.f32.mrf.mxu2 }
 0x19d   : > { %528 = vxpose.xlu0.b32.start [1/16] %v480_v3, 128  ;;  %v571_v3 = vadd.s32 80, %v561_v53 }
 0x1a4   : > { %v483_v4 = vpop.f32.mrf.mxu2 }
 0x1a5   : > { %529 = vxpose.xlu0.b32.cont [2/16] %v483_v4, 128  ;;  %v572_v4 = vadd.s32 88, %v561_v53 }
 0x1ac   : > { %v486_v5 = vpop.f32.mrf.mxu2 }
 0x1ad   : > { %530 = vxpose.xlu0.b32.cont [3/16] %v486_v5, 128  ;;  %v573_v5 = vadd.s32 96, %v561_v53 }
 0x1b4   : > { %v489_v6 = vpop.f32.mrf.mxu2 }
 0x1b5   : > { %531 = vxpose.xlu0.b32.cont [4/16] %v489_v6, 128  ;;  %v574_v6 = vadd.s32 104, %v561_v53 }
 0x1bc   : > { %v492_v7 = vpop.f32.mrf.mxu2 }
 0x1bd   : > { %532 = vxpose.xlu0.b32.cont [5/16] %v492_v7, 128  ;;  %v575_v7 = vadd.s32 112, %v561_v53 }
 0x1c4   : > { %v495_v8 = vpop.f32.mrf.mxu2 }
 0x1c5   : > { %533 = vxpose.xlu0.b32.cont [6/16] %v495_v8, 128  ;;  %v576_v8 = vadd.s32 120, %v561_v53 }
 0x1cc   : > { %v498_v9 = vpop.f32.mrf.mxu2 }
 0x1cd   : > { %534 = vxpose.xlu0.b32.cont [7/16] %v498_v9, 128 }
 0x1d4   : > { %v501_v10 = vpop.f32.mrf.mxu2 }
 0x1d5   : > { %535 = vxpose.xlu0.b32.cont [8/16] %v501_v10, 128 }
 0x1dc   : > { %v504_v11 = vpop.f32.mrf.mxu2 }
 0x1dd   : > { %536 = vxpose.xlu0.b32.cont [9/16] %v504_v11, 128 }
 0x1e4   : > { %v507_v12 = vpop.f32.mrf.mxu2 }
 0x1e5   : > { %537 = vxpose.xlu0.b32.cont [10/16] %v507_v12, 128 }
 0x1ec   : > { %v510_v13 = vpop.f32.mrf.mxu2 }
 0x1ed   : > { %538 = vxpose.xlu0.b32.cont [11/16] %v510_v13, 128 }
 0x1f4   : > { %v513_v14 = vpop.f32.mrf.mxu2 }
 0x1f5   : > { %539 = vxpose.xlu0.b32.cont [12/16] %v513_v14, 128 }
 0x202   : > { %v516_v15 = vpop.f32.mrf.mxu3 }
 0x203   : > { %540 = vxpose.xlu0.b32.cont [13/16] %v516_v15, 128 }
 0x20a   : > { %v519_v16 = vpop.f32.mrf.mxu3 }
 0x20b   : > { %541 = vxpose.xlu0.b32.cont [14/16] %v519_v16, 128 }
 0x212   : > { %v522_v17 = vpop.f32.mrf.mxu3 }
 0x213   : > { %542 = vxpose.xlu0.b32.cont [15/16] %v522_v17, 128 }
 0x21a   : > { %v525_v18 = vpop.f32.mrf.mxu3 }
 0x21b   : > { %543 = vxpose.xlu0.b32.end [16/16] %v525_v18, 128 }
 0x247   : > { %v1148_v19 = vpop.trf.xlu0 }
 0x24f   : > { %v1150_v20 = vpop.trf.xlu0 }
 0x257   : > { %v1152_v21 = vpop.trf.xlu0 }
 0x25f   : > { %v1154_v22 = vpop.trf.xlu0 }
 0x267   : > { %v1156_v23 = vpop.trf.xlu0 }
 0x268   : > { %v577_v36 = vmax.f32 %v1148_v19, %v1156_v23 }
 0x26f   : > { %v1158_v24 = vpop.trf.xlu0 }
 0x270   : > { %v578_v35 = vmax.f32 %v1150_v20, %v1158_v24 }
 0x277   : > { %v1160_v25 = vpop.trf.xlu0 }
 0x278   : > { %v579_v37 = vmax.f32 %v1152_v21, %v1160_v25 }
 0x27f   : > { %v1162_v26 = vpop.trf.xlu0 }
 0x280   : > { %v580_v38 = vmax.f32 %v1154_v22, %v1162_v26 }
 0x287   : > { %v1164_v27 = vpop.trf.xlu0 }
 0x288   : > { %v581_v40 = vmax.f32 %v577_v36, %v1164_v27 }
 0x28f   : > { %v1166_v28 = vpop.trf.xlu0 }
 0x290   : > { %v582_v39 = vmax.f32 %v578_v35, %v1166_v28 }
 0x297   : > { %v1168_v29 = vpop.trf.xlu0 }
 0x298   : > { %v583_v41 = vmax.f32 %v579_v37, %v1168_v29 }
 0x29f   : > { %v1170_v30 = vpop.trf.xlu0 }
 0x2a0   : > { %v584_v42 = vmax.f32 %v580_v38, %v1170_v30 }
 0x2a7   : > { %v1172_v31 = vpop.trf.xlu0 }
 0x2a8   : > { %v585_v45 = vmax.f32 %v581_v40, %v1172_v31 }
 0x2af   : > { %v1174_v32 = vpop.trf.xlu0 }
 0x2b0   : > { %v586_v43 = vmax.f32 %v582_v39, %v1174_v32 }
 0x2b2   : > { %v589_v34 = vmax.f32 %v585_v45, %v586_v43 }
 0x2b7   : > { %v1176_v33 = vpop.trf.xlu0 }
 0x2b8   : > { %v587_v46 = vmax.f32 %v583_v41, %v1176_v33 }
 0x2bf   : > { %v1191_v44 = vpop.trf.xlu0 }
 0x2c0   : > { %v588_v47 = vmax.f32 %v584_v42, %v1191_v44 }
 0x2c2   : > { %v590_v48 = vmax.f32 %v587_v46, %v588_v47 }
 0x2c4   : > { %v591_v49 = vmax.f32 %v589_v34, %v590_v48 }
 0x2c6   : > { %v592_v51 = vrot.slane %v591_v49, 4 }
 0x2c8   : > { %v593_v52 = vmax.f32 %v591_v49, %v592_v51 }
 0x2ca   : > { %v594_v54 = vrot.slane %v593_v52, 2 }
 0x2cc   : > { %v595_v55 = vmax.f32 %v593_v52, %v594_v54 }
 0x2ce   : > { %v596_v58 = vrot.slane %v595_v55, 1 }
 0x2d0   : > { %v597_v2 = vmax.f32 %v595_v55, %v596_v58 }
 0x2d2   : > { %vm598_vm1 = vcmp.eq.f32.partialorder %v1148_v19, %v597_v2  ;;  %vm599_vm2 = vcmp.eq.f32.partialorder %v1150_v20, %v597_v2  ;;  %vm600_vm3 = vcmp.eq.f32.partialorder %v1152_v21, %v597_v2  ;;  %vm601_vm4 = vcmp.eq.f32.partialorder %v1154_v22, %v597_v2 }
 0x2d3   : > { %vm602_vm5 = vcmp.eq.f32.partialorder %v1156_v23, %v597_v2  ;;  %vm603_vm6 = vcmp.eq.f32.partialorder %v1158_v24, %v597_v2  ;;  %vm604_vm7 = vcmp.eq.f32.partialorder %v1160_v25, %v597_v2  ;;  %vm605_vm8 = vcmp.eq.f32.partialorder %v1162_v26, %v597_v2 }
 0x2d4   : > { %vm606_vm9 = vcmp.eq.f32.partialorder %v1164_v27, %v597_v2  ;;  %vm607_vm10 = vcmp.eq.f32.partialorder %v1166_v28, %v597_v2  ;;  %vm608_vm11 = vcmp.eq.f32.partialorder %v1168_v29, %v597_v2  ;;  %vm609_vm12 = vcmp.eq.f32.partialorder %v1170_v30, %v597_v2 }
 0x2d5   : > { %vm610_vm13 = vcmp.eq.f32.partialorder %v1172_v31, %v597_v2  ;;  %vm611_vm14 = vcmp.eq.f32.partialorder %v1174_v32, %v597_v2  ;;  %vm612_vm15 = vcmp.eq.f32.partialorder %v1176_v33, %v597_v2  ;;  %v614_v9 = vsel %vm598_vm1, %v561_v53, 2147483647 }
 0x2d6   : > { %v615_v10 = vsel %vm599_vm2, %v562_v56, 2147483647  ;;  %v616_v11 = vsel %vm600_vm3, %v563_v57, 2147483647  ;;  %vm613_vm0 = vcmp.eq.f32.partialorder %v1191_v44, %v597_v2  ;;  %v617_v12 = vsel %vm601_vm4, %v564_v59, 2147483647 }
 0x2d7   : > { %v618_v13 = vsel %vm602_vm5, %v565_v60, 2147483647  ;;  %v619_v14 = vsel %vm603_vm6, %v566_v61, 2147483647  ;;  %v620_v15 = vsel %vm604_vm7, %v567_v62, 2147483647 }
 0x2d8   : > { %v621_v16 = vsel %vm605_vm8, %v568_v63, 2147483647  ;;  %v622_v17 = vsel %vm606_vm9, %v569_v0, 2147483647  ;;  %vm630_vm1 = vcmp.lt.s32.totalorder %v614_v9, %v618_v13  ;;  %v623_v18 = vsel %vm607_vm10, %v570_v1, 2147483647 }
 0x2d9   : > { %v624_v19 = vsel %vm608_vm11, %v571_v3, 2147483647  ;;  %v625_v20 = vsel %vm609_vm12, %v572_v4, 2147483647  ;;  %v631_v21 = vsel %vm630_vm1, %v614_v9, %v618_v13  ;;  %v626_v22 = vsel %vm610_vm13, %v573_v5, 2147483647 }
 0x2da   : > { %v627_v23 = vsel %vm611_vm14, %v574_v6, 2147483647  ;;  %v628_v24 = vsel %vm612_vm15, %v575_v7, 2147483647  ;;  %vm632_vm2 = vcmp.lt.s32.totalorder %v615_v10, %v619_v14  ;;  %v629_v25 = vsel %vm613_vm0, %v576_v8, 2147483647 }
 0x2db   : > { %v633_v26 = vsel %vm632_vm2, %v615_v10, %v619_v14  ;;  %vm634_vm3 = vcmp.lt.s32.totalorder %v616_v11, %v620_v15  ;;  %vm636_vm4 = vcmp.lt.s32.totalorder %v617_v12, %v621_v16  ;;  %vm638_vm5 = vcmp.lt.s32.totalorder %v631_v21, %v622_v17 }
 0x2dc   : > { %v635_v27 = vsel %vm634_vm3, %v616_v11, %v620_v15  ;;  %v637_v28 = vsel %vm636_vm4, %v617_v12, %v621_v16  ;;  %vm640_vm6 = vcmp.lt.s32.totalorder %v633_v26, %v623_v18  ;;  %v639_v29 = vsel %vm638_vm5, %v631_v21, %v622_v17 }
 0x2dd   : > { %v641_v30 = vsel %vm640_vm6, %v633_v26, %v623_v18  ;;  %vm642_vm7 = vcmp.lt.s32.totalorder %v635_v27, %v624_v19  ;;  %vm644_vm8 = vcmp.lt.s32.totalorder %v637_v28, %v625_v20  ;;  %vm646_vm9 = vcmp.lt.s32.totalorder %v639_v29, %v626_v22 }
 0x2de   : > { %v643_v31 = vsel %vm642_vm7, %v635_v27, %v624_v19  ;;  %v645_v32 = vsel %vm644_vm8, %v637_v28, %v625_v20  ;;  %vm648_vm10 = vcmp.lt.s32.totalorder %v641_v30, %v627_v23  ;;  %v647_v33 = vsel %vm646_vm9, %v639_v29, %v626_v22 }
 0x2df   : > { %v649_v35 = vsel %vm648_vm10, %v641_v30, %v627_v23  ;;  %vm650_vm11 = vcmp.lt.s32.totalorder %v643_v31, %v628_v24  ;;  %vm652_vm12 = vcmp.lt.s32.totalorder %v645_v32, %v629_v25 }
 0x2e0   : > { %v651_v36 = vsel %vm650_vm11, %v643_v31, %v628_v24  ;;  %v653_v37 = vsel %vm652_vm12, %v645_v32, %v629_v25  ;;  %vm654_vm13 = vcmp.lt.s32.totalorder %v647_v33, %v649_v35 }
 0x2e1   : > { %v655_v38 = vsel %vm654_vm13, %v647_v33, %v649_v35  ;;  %vm656_vm14 = vcmp.lt.s32.totalorder %v651_v36, %v653_v37 }
 0x2e2   : > { %v657_v39 = vsel %vm656_vm14, %v651_v36, %v653_v37 }
 0x2e3   : > { %vm658_vm15 = vcmp.lt.s32.totalorder %v655_v38, %v657_v39 }
 0x2e4   : > { %v659_v40 = vsel %vm658_vm15, %v655_v38, %v657_v39 }
 0x2e5   : > { %v660_v41 = vrot.slane %v659_v40, 4 }
 0x2e7   : > { %vm661_vm0 = vcmp.lt.s32.totalorder %v659_v40, %v660_v41 }
 0x2e8   : > { %v662_v42 = vsel %vm661_vm0, %v659_v40, %v660_v41 }
 0x2e9   : > { %v663_v43 = vrot.slane %v662_v42, 2 }
 0x2eb   : > { %vm664_vm1 = vcmp.lt.s32.totalorder %v662_v42, %v663_v43 }
 0x2ec   : > { %v665_v44 = vsel %vm664_vm1, %v662_v42, %v663_v43 }
 0x2ed   : > { %v666_v45 = vrot.slane %v665_v44, 1 }
 0x2ef   : > { %vm667_vm2 = vcmp.lt.s32.totalorder %v665_v44, %v666_v45 }
 0x2f0   : > { %v668_v46 = vsel %vm667_vm2, %v665_v44, %v666_v45 }
 0x2f1   : > { %669 = vst [vmem:[%s190_s13] sm:$0x1] %v668_v46 }
 0x2f2   : > { %877 = shalt.err (!%p874_p3)
}
 0x2f3   : > { %810 = dma.vmem_to_hbm [thread:$0]  (%p977_p5), %s682_s14, 16, %s684_s20, %s671_s22  }
 0x2f4 PF: > { %p816_p4 = scmp.ge.s32.totalorder %s912_s18, 2  ;;  %s695_s6 = sand.u32 1, %s900_s15  }
 0x2f5   : > { %s696_s7 = scalar_lea.sflag [#allocation3], %s695_s6 }
 0x2f6   : > { %p813_p7 = pnand %p816_p4, %p981_p6 }
 0x2f8   : > { %p814_p8 = pneg %p813_p7 }
 0x2fa   : > { %895 = dma.done.wait (%p814_p8), %s696_s7, 16  }
 0x2fb   : > { %897 = vsyncadd (%p814_p8), %s696_s7, 4294967280  ;;  %p14_p9 = scmp.ge.s32.totalorder %s964_s21, 4   ;;  %s1277_s15 = smov %s904_s16 }
 0x2fc   : > { %s1278_s16 = smov %s908_s17  ;;  %s1279_s17 = smov %s975_s24 }
 0x2fd   : > { %s1280_s18 = smov %s964_s21  ;;  %16 = sbr.rel (!%p14_p9) target bundleno = 3 (0x3), region = 72 }
 0x302   :  { %701 = vsyncpa [#allocation3], 1 }
 0x303   :  { %703 = vsyncpa [#allocation3 + $0x1], 1 }

</bundles_post_ra>
